<compile_context>
chip_gen: v6e
topology: v6e:2x2x1
jax: 0.10.0
libtpu: 0.0.40
codegen_flags: <defaults>
</compile_context>

<pallas_src>
import jax
import jax.numpy as jnp
from jax.experimental import pallas as pl
from jax.experimental.pallas import tpu as pltpu

EPS = 1e-5  # nn.LayerNorm default


def _round_up(x, m):
    return (x + m - 1) // m * m


def _layernorm(y, gamma, beta, out_dtype):
    """Single-pass LayerNorm over the last axis. `y` is f32 (rows, H)."""
    inv_h = jnp.float32(1.0 / y.shape[-1])
    s1 = jnp.sum(y, axis=-1, keepdims=True)
    s2 = jnp.sum(y * y, axis=-1, keepdims=True)
    mean = s1 * inv_h
    # E[y^2] - mean^2 can go slightly negative from f32 rounding; clamp.
    var = jnp.maximum(s2 * inv_h - mean * mean, 0.0)
    inv = jax.lax.rsqrt(var + EPS)
    return ((y - mean) * inv * gamma + beta).astype(out_dtype)


def _fused_kernel_resident(x_ref, w_ref, b_ref, g_ref, beta_ref, o_ref):
    """Linear (x @ W + b) + LayerNorm with W fully VMEM-resident.

    x_ref:    (TILE_N, H_in)   bf16 activations (one row tile)
    w_ref:    (H_in, H_out)    bf16 weight, pre-transposed once at init
    b/g/beta: (1, H_out)       f32
    o_ref:    (TILE_N, H_out)  bf16 output tile
    """
    y = jnp.dot(x_ref[...], w_ref[...], preferred_element_type=jnp.float32)
    y = y + b_ref[...]
    o_ref[...] = _layernorm(y, g_ref[...], beta_ref[...], o_ref.dtype)


def _fused_kernel_ktiled(x_ref, w_ref, b_ref, g_ref, beta_ref, o_ref, acc_ref):
    """Same math, but H_in is tiled over grid axis 1 with an f32 accumulator."""
    k = pl.program_id(1)

    @pl.when(k == 0)
    def _():
        acc_ref[...] = jnp.zeros_like(acc_ref)

    acc_ref[...] += jnp.dot(x_ref[...], w_ref[...],
                            preferred_element_type=jnp.float32)

    @pl.when(k == pl.num_programs(1) - 1)
    def _():
        y = acc_ref[...] + b_ref[...]
        o_ref[...] = _layernorm(y, g_ref[...], beta_ref[...], o_ref.dtype)


def fused_linear_layernorm(x, w, b, gamma, beta, *, tile_n=None,
                           max_resident_w_bytes=8 * 1024 * 1024,
                           vmem_tile_budget_bytes=24 * 1024 * 1024):
    """LayerNorm(x @ w + b) as one fused Pallas kernel.

    x: (N, H_in) bf16; w: (H_in, H_out) bf16 (pre-transposed torch weight);
    b/gamma/beta: (1, H_out) f32.  Returns (N, H_out) bf16.
    """
    n, h_in = x.shape
    h_out = w.shape[1]
    assert w.shape == (h_in, h_out)

    # --- K (H_in) tiling: keep W resident unless its slab is too big (v7x
    # has only 64 MiB VMEM per TC and each TC holds its own copy). ---
    w_bytes = h_in * h_out * 2
    if w_bytes <= max_resident_w_bytes or h_in % 128 != 0:
        tile_k = h_in
    else:
        tile_k = 128  # always divides h_in here (h_in % 128 == 0)
        for cand in range(256, h_in, 128):
            if h_in % cand == 0 and cand * h_out * 2 <= max_resident_w_bytes:
                tile_k = cand
    k_tiles = h_in // tile_k

    # --- Row tile: biggest multiple of 8 that keeps the double-buffered
    # x / out tiles + f32 accumulator inside the VMEM budget. ---
    if tile_n is None:
        per_row = 2 * tile_k * 2 + 2 * h_out * 2 + h_out * 4
        avail = vmem_tile_budget_bytes - 2 * tile_k * h_out * 2 - 8 * h_out * 4
        tile_n = max(8, min(2048, max(avail, per_row) // per_row // 8 * 8))
    else:
        tile_n = max(8, _round_up(int(tile_n), 8))
    tile_n = min(tile_n, _round_up(n, 8))
    n_tiles = pl.cdiv(n, tile_n)   # ragged last block handled by masked stores

    # --- Explicit scoped-VMEM limit (v5e default is only 16 MiB). ---
    vmem_bytes = (
        2 * tile_k * h_out * 2        # weight slab(s)
        + 2 * tile_n * tile_k * 2     # x double buffer (bf16)
        + 2 * tile_n * h_out * 2      # out double buffer (bf16)
        + tile_n * h_out * 4          # f32 accumulator / epilogue temporaries
        + 8 * h_out * 4               # bias / gamma / beta (+ padding slack)
    )
    vmem_limit = int(min(64 * 1024 * 1024, max(32 * 1024 * 1024, 2 * vmem_bytes)))

    # Grid-invariant operands: whole array resident in VMEM, DMA'd once,
    # single-buffered (no 2x double-buffer charge on the weight).
    resident = pl.BlockSpec(memory_space=pltpu.MemorySpace.VMEM)

    cost = pl.CostEstimate(
        flops=2 * n * h_in * h_out + 10 * n * h_out,
        transcendentals=n,                       # one rsqrt per row
        bytes_accessed=(n * h_in * 2 + h_in * h_out * 2
                        + n * h_out * 2 + 3 * h_out * 4),
    )

    if k_tiles == 1:
        grid_spec = pltpu.PrefetchScalarGridSpec(
            num_scalar_prefetch=0,
            grid=(n_tiles,),
            in_specs=[
                pl.BlockSpec((tile_n, h_in), lambda i: (i, 0)),  # x row tiles
                resident,                                        # W
                resident,                                        # bias
                resident,                                        # gamma
                resident,                                        # beta
            ],
            out_specs=pl.BlockSpec((tile_n, h_out), lambda i: (i, 0)),
        )
        kernel = _fused_kernel_resident
        dims = ("parallel",)
    else:
        grid_spec = pltpu.PrefetchScalarGridSpec(
            num_scalar_prefetch=0,
            grid=(n_tiles, k_tiles),
            in_specs=[
                pl.BlockSpec((tile_n, tile_k), lambda i, k: (i, k)),  # x
                pl.BlockSpec((tile_k, h_out), lambda i, k: (k, 0)),   # W slab
                resident,                                             # bias
                resident,                                             # gamma
                resident,                                             # beta
            ],
            out_specs=pl.BlockSpec((tile_n, h_out), lambda i, k: (i, 0)),
            scratch_shapes=[pltpu.VMEM((tile_n, h_out), jnp.float32)],
        )
        kernel = _fused_kernel_ktiled
        dims = ("parallel", "arbitrary")

    return pl.pallas_call(
        kernel,
        out_shape=jax.ShapeDtypeStruct((n, h_out), jnp.bfloat16),
        grid_spec=grid_spec,
        compiler_params=pltpu.CompilerParams(
            dimension_semantics=dims,
            vmem_limit_bytes=vmem_limit,
        ),
        cost_estimate=cost,
    )(x, w, b, gamma, beta)


def init_params(key, vocab=64, hidden=128, padding_idx=0):
    """Deterministic parameter init mirroring TorchModel._init_weights."""
    k_emb, k_lin = jax.random.split(key)
    # nn.Embedding: N(0, 0.02), padding row zeroed.  Stored bf16 so the gather
    # already produces bf16 activations (no wrapper-side cast pass).
    emb = 0.02 * jax.random.normal(k_emb, (vocab, hidden), dtype=jnp.float32)
    emb = emb.at[padding_idx].set(0.0)
    emb = emb.astype(jnp.bfloat16)
    # nn.Linear(hidden, hidden): weight N(0, 0.02) in torch (out, in) layout,
    # bias 0.  Pre-transposed ONCE to (in, out) bf16 -> canonical [M,K]x[K,N]
    # MXU feed inside the kernel.
    w_out_in = 0.02 * jax.random.normal(k_lin, (hidden, hidden), dtype=jnp.float32)
    w = w_out_in.T.astype(jnp.bfloat16)
    b = jnp.zeros((1, hidden), dtype=jnp.float32)
    # nn.LayerNorm(hidden): weight 1, bias 0 (kept f32 for the LN epilogue).
    gamma = jnp.ones((1, hidden), dtype=jnp.float32)
    beta = jnp.zeros((1, hidden), dtype=jnp.float32)
    return emb, w, b, gamma, beta


def torch_model_forward(token_ids, params, *, tile_n=None,
                        max_resident_w_bytes=8 * 1024 * 1024):
    """Representative forward: Embedding -> Linear -> LayerNorm.

    token_ids: (B, S) int32.  Returns (B, S, H) bfloat16.
    """
    emb, w, b, gamma, beta = params
    bsz, seq = token_ids.shape
    hidden = w.shape[1]
    # Embedding gather: bf16 table -> bf16 activations (no extra cast pass).
    x = jnp.take(emb, token_ids.reshape(-1), axis=0)  # (B*S, H) bf16
    y = fused_linear_layernorm(x, w, b, gamma, beta, tile_n=tile_n,
                               max_resident_w_bytes=max_resident_w_bytes)
    return y.reshape(bsz, seq, hidden)


def _reference(token_ids, params):
    """Plain-JAX reference on the same (bf16-stored) params, f32 math."""
    emb, w, b, gamma, beta = params
    x = jnp.take(emb, token_ids.reshape(-1), axis=0).astype(jnp.float32)
    y = x @ w.astype(jnp.float32) + b
    mu = jnp.mean(y, axis=-1, keepdims=True)
    var = jnp.mean((y - mu) ** 2, axis=-1, keepdims=True)
    out = (y - mu) * jax.lax.rsqrt(var + EPS) * gamma + beta
    return out.reshape(*token_ids.shape, w.shape[1])


if __name__ == "__main__":
    key = jax.random.PRNGKey(0)
    k_p1, k_i1, k_p2, k_i2 = jax.random.split(key, 4)

    # ---- Test 1: resident-weight path (H = 128), multi-step row grid. ----
    B, S, V, H = 4, 8, 64, 128
    params = init_params(k_p1, vocab=V, hidden=H, padding_idx=0)
    ids = jax.random.randint(k_i1, (B, S), 0, V, dtype=jnp.int32)
    # tile_n=16 so the (B*S)=32-row demo exercises a 2-step grid; real
    # workloads leave tile_n=None (VMEM-budget-derived, up to 2048 rows).
    out = jax.block_until_ready(torch_model_forward(ids, params, tile_n=16))
    assert out.shape == (B, S, H) and out.dtype == jnp.bfloat16
    ref = _reference(ids, params)
    err = float(jnp.max(jnp.abs(out.astype(jnp.float32) - ref)))
    assert jnp.allclose(out.astype(jnp.float32), ref, atol=3e-2, rtol=3e-2), err

    # ---- Test 2: K-tiled accumulator path (H = 256, forced small resident-W
    # budget -> tile_k = 128, 2 K steps).  H = 256 also fills the full
    # 2x256x256 v6e/v7x MXU tile width. ----
    B2, S2, V2, H2 = 4, 8, 64, 256
    params2 = init_params(k_p2, vocab=V2, hidden=H2, padding_idx=0)
    ids2 = jax.random.randint(k_i2, (B2, S2), 0, V2, dtype=jnp.int32)
    out2 = jax.block_until_ready(
        torch_model_forward(ids2, params2, tile_n=16,
                            max_resident_w_bytes=64 * 1024))
    assert out2.shape == (B2, S2, H2) and out2.dtype == jnp.bfloat16
    ref2 = _reference(ids2, params2)
    err2 = float(jnp.max(jnp.abs(out2.astype(jnp.float32) - ref2)))
    assert jnp.allclose(out2.astype(jnp.float32), ref2, atol=3e-2, rtol=3e-2), err2

    print("KERNEL_OK")
</pallas_src>

<mosaic_0001>
module attributes {stable_mosaic.version = 11 : i64} {
  func.func @_fused_kernel_resident(%arg0: i32, %arg1: memref<16x128xbf16, #tpu.memory_space<vmem>>, %arg2: memref<128x128xbf16, #tpu.memory_space<vmem>>, %arg3: memref<1x128xf32, #tpu.memory_space<vmem>>, %arg4: memref<1x128xf32, #tpu.memory_space<vmem>>, %arg5: memref<1x128xf32, #tpu.memory_space<vmem>>, %arg6: memref<16x128xbf16, #tpu.memory_space<vmem>>) attributes {dimension_semantics = [#tpu.dimension_semantics<parallel>], iteration_bounds = array<i64: 2>, scalar_prefetch = 0 : i64, scratch_operands = 0 : i64, tpu.core_type = #tpu.core_type<tc>, window_params = [{transform_indices = @transform_0, window_bounds = array<i64: 16, 128>}, {pipeline_mode = #tpu.pipeline_mode<synchronous>, transform_indices = @transform_1, window_bounds = array<i64: 128, 128>}, {pipeline_mode = #tpu.pipeline_mode<synchronous>, transform_indices = @transform_2, window_bounds = array<i64: 1, 128>}, {pipeline_mode = #tpu.pipeline_mode<synchronous>, transform_indices = @transform_3, window_bounds = array<i64: 1, 128>}, {pipeline_mode = #tpu.pipeline_mode<synchronous>, transform_indices = @transform_4, window_bounds = array<i64: 1, 128>}, {transform_indices = @transform_5, window_bounds = array<i64: 16, 128>}]} {
    %c0 = arith.constant 0 : index
    %c0_0 = arith.constant 0 : index
    %0 = vector.load %arg1[%c0, %c0_0] : memref<16x128xbf16, #tpu.memory_space<vmem>>, vector<16x128xbf16>
    %c0_1 = arith.constant 0 : index
    %c0_2 = arith.constant 0 : index
    %1 = vector.load %arg2[%c0_1, %c0_2] : memref<128x128xbf16, #tpu.memory_space<vmem>>, vector<128x128xbf16>
    %cst = arith.constant dense<0.000000e+00> : vector<16x128xf32>
    %2 = tpu.matmul %0, %1, %cst {dimension_numbers = #tpu.dot_dimension_numbers<[1], [0], [0], [1], [0, 0, 1, 1], [], []>} : vector<16x128xbf16>, vector<128x128xbf16>, vector<16x128xf32> -> vector<16x128xf32>
    %c0_3 = arith.constant 0 : index
    %c0_4 = arith.constant 0 : index
    %3 = vector.load %arg3[%c0_3, %c0_4] : memref<1x128xf32, #tpu.memory_space<vmem>>, vector<1x128xf32>
    %4 = vector.broadcast %3 : vector<1x128xf32> to vector<16x128xf32>
    %5 = arith.addf %2, %4 : vector<16x128xf32>
    %c0_5 = arith.constant 0 : index
    %c0_6 = arith.constant 0 : index
    %6 = vector.load %arg4[%c0_5, %c0_6] : memref<1x128xf32, #tpu.memory_space<vmem>>, vector<1x128xf32>
    %c0_7 = arith.constant 0 : index
    %c0_8 = arith.constant 0 : index
    %7 = vector.load %arg5[%c0_7, %c0_8] : memref<1x128xf32, #tpu.memory_space<vmem>>, vector<1x128xf32>
    %cst_9 = arith.constant dense<0.000000e+00> : vector<16xf32>
    %8 = vector.multi_reduction <add>, %5, %cst_9 [1] : vector<16x128xf32> to vector<16xf32>
    %9 = vector.shape_cast %8 : vector<16xf32> to vector<16x1xf32>
    %10 = arith.mulf %5, %5 : vector<16x128xf32>
    %cst_10 = arith.constant dense<0.000000e+00> : vector<16xf32>
    %11 = vector.multi_reduction <add>, %10, %cst_10 [1] : vector<16x128xf32> to vector<16xf32>
    %12 = vector.shape_cast %11 : vector<16xf32> to vector<16x1xf32>
    %cst_11 = arith.constant 7.812500e-03 : f32
    %13 = vector.broadcast %cst_11 : f32 to vector<16x1xf32>
    %14 = arith.mulf %9, %13 : vector<16x1xf32>
    %cst_12 = arith.constant 7.812500e-03 : f32
    %15 = vector.broadcast %cst_12 : f32 to vector<16x1xf32>
    %16 = arith.mulf %12, %15 : vector<16x1xf32>
    %17 = arith.mulf %14, %14 : vector<16x1xf32>
    %18 = arith.subf %16, %17 : vector<16x1xf32>
    %cst_13 = arith.constant 0.000000e+00 : f32
    %19 = vector.broadcast %cst_13 : f32 to vector<16x1xf32>
    %20 = arith.maximumf %18, %19 : vector<16x1xf32>
    %cst_14 = arith.constant 9.99999974E-6 : f32
    %21 = vector.broadcast %cst_14 : f32 to vector<16x1xf32>
    %22 = arith.addf %20, %21 : vector<16x1xf32>
    %23 = math.rsqrt %22 : vector<16x1xf32>
    %24 = vector.broadcast %14 : vector<16x1xf32> to vector<16x128xf32>
    %25 = arith.subf %5, %24 : vector<16x128xf32>
    %26 = vector.broadcast %23 : vector<16x1xf32> to vector<16x128xf32>
    %27 = arith.mulf %25, %26 : vector<16x128xf32>
    %28 = vector.broadcast %6 : vector<1x128xf32> to vector<16x128xf32>
    %29 = arith.mulf %27, %28 : vector<16x128xf32>
    %30 = vector.broadcast %7 : vector<1x128xf32> to vector<16x128xf32>
    %31 = arith.addf %29, %30 : vector<16x128xf32>
    %32 = arith.truncf %31 : vector<16x128xf32> to vector<16x128xbf16>
    %c0_15 = arith.constant 0 : index
    %c0_16 = arith.constant 0 : index
    %33 = vector.load %arg6[%c0_15, %c0_16] : memref<16x128xbf16, #tpu.memory_space<vmem>>, vector<16x128xbf16>
    tpu.vector_store %arg6[%c0_15, %c0_16], %32 {strides = array<i32>} : memref<16x128xbf16, #tpu.memory_space<vmem>>, vector<16x128xbf16>,
    return
  }
  func.func @transform_0(%arg0: i32) -> (i32, i32) {
    %c0_i32 = arith.constant 0 : i32
    %c0_i32_0 = arith.constant 0 : i32
    return %arg0, %c0_i32 : i32, i32
  }
  func.func @transform_1(%arg0: i32) -> (i32, i32) {
    %c0_i32 = arith.constant 0 : i32
    %c0_i32_0 = arith.constant 0 : i32
    %c0_i32_1 = arith.constant 0 : i32
    return %c0_i32, %c0_i32_0 : i32, i32
  }
  func.func @transform_2(%arg0: i32) -> (i32, i32) {
    %c0_i32 = arith.constant 0 : i32
    %c0_i32_0 = arith.constant 0 : i32
    %c0_i32_1 = arith.constant 0 : i32
    return %c0_i32, %c0_i32_0 : i32, i32
  }
  func.func @transform_3(%arg0: i32) -> (i32, i32) {
    %c0_i32 = arith.constant 0 : i32
    %c0_i32_0 = arith.constant 0 : i32
    %c0_i32_1 = arith.constant 0 : i32
    return %c0_i32, %c0_i32_0 : i32, i32
  }
  func.func @transform_4(%arg0: i32) -> (i32, i32) {
    %c0_i32 = arith.constant 0 : i32
    %c0_i32_0 = arith.constant 0 : i32
    %c0_i32_1 = arith.constant 0 : i32
    return %c0_i32, %c0_i32_0 : i32, i32
  }
  func.func @transform_5(%arg0: i32) -> (i32, i32) {
    %c0_i32 = arith.constant 0 : i32
    %c0_i32_0 = arith.constant 0 : i32
    return %arg0, %c0_i32 : i32, i32
  }
}

</mosaic_0001>

<bundles_post_ra>
// kernel: tpu_custom_call.1
= control target key start
LH: loop header
LB: loop body
LE: loop exit
PB: predicated region body
PF: predicated region fallthrough
CT: control target
= control target key end

     0   :  { %10 = vsyncpa [#allocation3], 0  ;;  %s1040_s0 = inlined_call_operand.hbm [shape: bf16[32,128], index: 0, kind: input, shape index: {}]   ;;  %s1041_s1 = inlined_call_operand.hbm [shape: bf16[128,128], index: 1, kind: input, shape index: {}]   ;;  %s1042_s2 = inlined_call_operand.vmem [shape: f32[1,128], index: 2, kind: input, shape index: {}]   ;;  %s1043_s3 = inlined_call_operand.vmem [shape: f32[1,128], index: 3, kind: input, shape index: {}]   ;;  %s1044_s4 = inlined_call_operand.vmem [shape: f32[1,128], index: 4, kind: input, shape index: {}]   ;;  %s1045_s5 = inlined_call_operand.hbm [shape: bf16[32,128], index: 5, kind: output, shape index: {}]  }
   0x1   :  { %12 = vsyncpa [#allocation3 + $0x1], 0 }
   0x2   :  { %13 = vsyncpa [#allocation6], 0 }
   0x3   :  { %14 = vsyncpa [#allocation4], 0 }
   0x4   :  { %16 = vsyncpa [#allocation4 + $0x1], 0  ;;  %s841_s18 = smov 0   ;;  %s843_s19 = smov 0  }
   0x5   :  { %s845_s20 = smov 0   ;;  %s847_s21 = smov 0  }
   0x6 LB: > { %s862_s22 = sadd.s32 4294967295, %s800_s21   ;;  %s534_s23 = sadd.s32 4294967294, %s800_s21   ;;  %s800_s21 = sphi %s847_s21, %s1069_s21   ;;  %s796_s20 = sphi %s845_s20, %s1068_s20   ;;  %s792_s19 = sphi %s843_s19, %s1067_s19   ;;  %s788_s18 = sphi %s841_s18, %s1066_s18  }
   0x7   : > { %p42_p0 = scmp.ne.s32.totalorder %s792_s19, %s788_s18  ;;  %p1046_p1 = scmp.eq.s32.totalorder %s862_s22, 0 }
   0x8   : > { %p156_p3 = scmp.eq.s32.totalorder %s534_s23, 1  ;;  %p535_p5 = scmp.ge.s32.totalorder %s800_s21, 1 }
   0x9   : > { %p871_p4 = por %p1046_p1, %p42_p0  ;;  %p163_p7 = scmp.lt.s32.totalorder %s800_s21, 3 }
   0xa   : > { %p876_p6 = por %p156_p3, %p42_p0  ;;  %s802_s27 = smov [#allocation5]  }
   0xb   : > { %s1051_s24 = scalar_select %p871_p4, 1, 0 }
   0xc   : > { %s1052_s25 = scalar_select %p876_p6, 1, 0 }
   0xd   : > { %p881_p8 = pnand %p535_p5, %p163_p7  ;;  %s175_s28 = sshll.u32 %s802_s27, 4  ;;  %s176_s28 = int_to_ptr.vmem [resolvable:$true] %s175_s28 }
   0xe   : > { %s895_s30 = sadd.s32 1, %s800_s21   ;;  %s29_s6 = sadd.s32 1, %s796_s20 }
   0xf   : > { %s1053_s26 = scalar_select %p881_p8, 1, 0 }
  0x10   : > { %p610_p9 = pneg %p881_p8  ;;  %s26_s7 = ssub.s32 %s800_s21, %s895_s30 }
  0x11   : > { %s689_s8 = scalar_lea.vmem %s176_s28, 1024  ;;  %p697_p5 = scmp.lt.s32.totalorder %s176_s28, %s176_s28 }
  0x12   : > { %p890_p11 = pnand %p610_p9, %p1046_p1  ;;  %p690_p13 = scmp.ne.s32.totalorder %s176_s28, %s689_s8 }
  0x13   : > { %p698_p7 = scmp.lt.s32.totalorder %s689_s8, %s689_s8 }
  0x14   : > { %p680_p12 = pneg %p890_p11 }
  0x15   : > { %p699_p10 = por %p698_p7, %p697_p5 }
  0x16   : > { %p692_p0 = pnand %p690_p13, %p680_p12 }
  0x18   : > { %p693_p3 = pneg %p692_p0 }
  0x1a   : > { %p700_p2 = pnand %p699_p10, %p693_p3 }
  0x1c   : > { %703 = shalt.err (!%p700_p2)
}
  0x1d   : > { %s1047_s9 = smov 64   ;;  %s804_s10 = smov 4  }
  0x1e   : > { %613 = dma.hbm_to_vmem [thread:$0]  (!%p890_p11), %s1041_s1, 1024, %s176_s28, [#allocation6], %s1047_s9, %s1047_s9, %s804_s10  }
  0x1f   : > { %p27_p2 = scmp.eq.s32.totalorder %s26_s7, 0  ;;  %p36_p9 = scmp.ne.s32.totalorder %s796_s20, %s792_s19 }
  0x20   : > { %p37_p10 = scmp.eq.s32.totalorder %s800_s21, 0  ;;  %p623_p12 = scmp.lt.s32.totalorder %s800_s21, 2 }
  0x21   : > { %s915_s13 = scalar_select %p27_p2, %s796_s20, %s29_s6  }
  0x22   : > { %p38_p13 = por %p37_p10, %p36_p9  ;;  %p1055_p0 = scmp.eq.s32.totalorder %s862_s22, 1 }
  0x23   : > { %s198_s15 = sand.u32 1, %s796_s20   ;;  %s564_s16 = sshll.u32 %s800_s21, 7 }
  0x24   : > { %p919_p3 = por %p1055_p0, %p36_p9  ;;  %s538_s17 = sshll.u32 %s198_s15, 3 }
  0x25   : > { %s928_s29 = scalar_lea.hbm %s1040_s0, %s564_s16  ;;  %s202_s28 = scalar_lea.vmem [#allocation2], %s538_s17 }
  0x26   : > { %s1056_s14 = scalar_select %p919_p3, 1, 0 }
  0x27   : > { %s209_s6 = sshll.u32 %s202_s28, 4  ;;  %p930_p11 = pnand %p623_p12, %p38_p13  ;;  %s934_s6 = int_to_ptr.vmem [resolvable:$true] %s209_s6 }
  0x28   : > { %s936_s8 = scalar_lea.sflag [#allocation3], %s198_s15  ;;  %s704_s11 = scalar_lea.hbm %s928_s29, 128 }
  0x29   : > { %p705_p5 = scmp.ne.s32.totalorder %s928_s29, %s704_s11  ;;  %p706_p7 = pneg %p930_p11 }
  0x2a   : > { %s709_s17 = scalar_lea.hbm %s1040_s0, 256  ;;  %p710_p10 = scmp.lt.s32.totalorder %s928_s29, %s1040_s0 }
  0x2b   : > { %p707_p2 = pnand %p706_p7, %p705_p5  ;;  %p711_p12 = scmp.lt.s32.totalorder %s709_s17, %s704_s11 }
  0x2d   : > { %p708_p9 = pneg %p707_p2  ;;  %p712_p13 = por %p711_p12, %p710_p10 }
  0x2f   : > { %p713_p0 = pnand %p712_p13, %p708_p9 }
  0x31   : > { %716 = shalt.err (!%p713_p0)
}
  0x32   : > { %s717_s15 = scalar_lea.vmem %s934_s6, 128  ;;  %s805_s28 = smov [#allocation2]  }
  0x33   : > { %p718_p1 = scmp.ne.s32.totalorder %s934_s6, %s717_s15  ;;  %s722_s9 = sshll.u32 %s805_s28, 4  ;;  %s723_s9 = int_to_ptr.vmem [resolvable:$false] %s722_s9 }
  0x34   : > { %s724_s12 = scalar_lea.vmem %s723_s9, 256  ;;  %p725_p2 = scmp.lt.s32.totalorder %s934_s6, %s723_s9 }
  0x35   : > { %p720_p6 = pnand %p718_p1, %p706_p7  ;;  %p726_p3 = scmp.lt.s32.totalorder %s724_s12, %s717_s15 }
  0x37   : > { %p721_p5 = pneg %p720_p6  ;;  %p727_p4 = por %p726_p3, %p725_p2 }
  0x39   : > { %p728_p8 = pnand %p727_p4, %p721_p5 }
  0x3b   : > { %731 = shalt.err (!%p728_p8)
}
  0x3c   : > { %s1058_s11 = smov 64   ;;  %p1059_p1 = scmp.ne.s32.totalorder %s1053_s26, 0 }
  0x3d   : > { %617 = dma.hbm_to_vmem [thread:$0]  (!%p930_p11), %s928_s29, 128, %s934_s6, %s936_s8, %s1058_s11, %s1058_s11, %s804_s10  }
  0x3e   : > { %221 = sbr.rel (%p1059_p1) target bundleno = 487 (0x1e7), region = 40  ;;  %s963_s16 = sand.u32 (!%p1059_p1), 1, %s792_s19  }
  0x3f   : > { %s542_s9 = sshll.u32 (!%p1059_p1), %s963_s16, 3  ;;  %s224_s17 = scalar_lea.sflag (!%p1059_p1), [#allocation3], %s963_s16 }
  0x40   : > { %s969_s7 = scalar_lea.vmem (!%p1059_p1), [#allocation2], %s542_s9  ;;  %p1060_p4 = scmp.ne.s32.totalorder (!%p1059_p1), %s1051_s24, 0 }
  0x43   : > { %775 = dma.done.wait (%p1060_p4), %s224_s17, 128  }
  0x44   : > { %777 = vsyncadd (%p1060_p4), %s224_s17, 4294967168  ;;  %p1061_p6 = scmp.eq.s32.totalorder %s862_s22, 0 }
  0x46   : > { %779 = dma.done.wait (%p1061_p6), [#allocation6], 1024   ;;  %p1062_p8 = pmov %p1061_p6 }
  0x47   : > { %v806_v0 = vmov 0.0   ;;  %vm807_vm0 = vmmov 0   ;;  %v665_v1 = vld [vmem:[#allocation5 + $0x38] sm:$0xff]   ;;  %v666_v2 = vld [vmem:[#allocation5 + $0x30] sm:$0xff]   ;;  %v667_v3 = vld [vmem:[#allocation5 + $0x28] sm:$0xff]   ;;  %s567_s23 = sshll.u32 %s862_s22, 7 }
  0x48   : > { %781 = vsyncadd (%p1062_p8), [#allocation6], 4294966272  ;;  %582 = vmatprep.subr.bf16.mxu0 %v806_v0  ;;  %598 = vmatprep.mubr.msk.bf16.mxu0 %vm807_vm0, %v806_v0  ;;  %v668_v4 = vld [vmem:[#allocation5 + $0x20] sm:$0xff]   ;;  %v669_v5 = vld [vmem:[#allocation5 + $0x18] sm:$0xff]   ;;  %s257_s27 = scalar_lea.vmem [#allocation7], %s542_s9  ;;  %s995_s11 = scalar_lea.hbm %s1045_s5, %s567_s23 }
  0x49   : > { %583 = vmatpush3.bf16.msra.mxu0 %v665_v1  ;;  %v670_v6 = vld [vmem:[#allocation5 + $0x10] sm:$0xff]   ;;  %v671_v7 = vld [vmem:[#allocation5 + $0x8] sm:$0xff]   ;;  %v672_v8 = vld [vmem:[#allocation5] sm:$0xff]   ;;  %s451_s15 = sshll.u32 %s257_s27, 4  ;;  %s438_s17 = scalar_lea.sflag [#allocation4], %s963_s16  ;;  %s997_s15 = int_to_ptr.vmem [resolvable:$true] %s451_s15 }
  0x4a   : > { %584 = vmatprep.subr.bf16.mxu0 %v806_v0  ;;  %v673_v9 = vld [vmem:[%s969_s7] sm:$0xff]   ;;  %s732_s7 = scalar_lea.vmem %s997_s15, 128  ;;  %p1063_p11 = scmp.ne.s32.totalorder %s1056_s14, 0 }
  0x4b   : > { %v545_v10 = vld [vmem:[%s1042_s2] ss:$0 sm:$0xff]  ;;  %p733_p3 = scmp.ne.s32.totalorder %s997_s15, %s732_s7  ;;  %s808_s22 = smov [#allocation7]  }
  0x4c   : > { %v555_v38 = vld [vmem:[%s1043_s3] ss:$0 sm:$0xff]  ;;  %s736_s9 = sshll.u32 %s808_s22, 4  ;;  %s737_s9 = int_to_ptr.vmem [resolvable:$false] %s736_s9 }
  0x4d   : > { %585 = vmatpush3.bf16.msra.mxu0 %v666_v2  ;;  %v556_v43 = vld [vmem:[%s1044_s4] ss:$0 sm:$0xff]  ;;  %p734_p7 = pnand %p733_p3, %p1063_p11  ;;  %s738_s24 = scalar_lea.vmem %s737_s9, 256 }
  0x4e   : > { %586 = vmatprep.subr.bf16.mxu0 %v806_v0  ;;  %p739_p10 = scmp.lt.s32.totalorder %s997_s15, %s737_s9  ;;  %p740_p12 = scmp.lt.s32.totalorder %s738_s24, %s732_s7 }
  0x4f   : > { %p735_p9 = pneg %p734_p7 }
  0x50   : > { %p741_p13 = por %p740_p12, %p739_p10 }
  0x51   : > { %587 = vmatpush3.bf16.msra.mxu0 %v667_v3 }
  0x52   : > { %588 = vmatprep.subr.bf16.mxu0 %v806_v0  ;;  %p742_p0 = pnand %p741_p13, %p735_p9 }
  0x55   : > { %589 = vmatpush3.bf16.msra.mxu0 %v668_v4 }
  0x56   : > { %590 = vmatprep.subr.bf16.mxu0 %v806_v0 }
  0x59   : > { %591 = vmatpush3.bf16.msra.mxu0 %v669_v5 }
  0x5a   : > { %592 = vmatprep.subr.bf16.mxu0 %v806_v0 }
  0x5d   : > { %593 = vmatpush3.bf16.msra.mxu0 %v670_v6 }
  0x5e   : > { %594 = vmatprep.subr.bf16.mxu0 %v806_v0 }
  0x61   : > { %595 = vmatpush3.bf16.msra.mxu0 %v671_v7 }
  0x62   : > { %596 = vmatprep.subr.bf16.mxu0 %v806_v0 }
  0x65   : > { %597 = vmatpush3.bf16.msra.mxu0 %v672_v8 }
  0x68   : > { %599 = vmatmul.mubr.bf16.vlgmr.msra.gmra.mxu0 %v673_v9 }
 0x128   : > { %v374_v11 = vpop.f32.mrf.mxu0 }
 0x129   : > { %v375_v12 = vadd.f32 %v545_v10, %v374_v11 }
 0x12a   : > { %v600_v13 = vpop.f32.mrf.mxu0 }
 0x12b   : > { %383 = vadd.xlane.f32.xlu0 %v375_v12  ;;  %v387_v14 = vmul.f32 %v375_v12, %v375_v12 }
 0x12c   : > { %v377_v15 = vpop.f32.mrf.mxu0 }
 0x12d   : > { %v378_v16 = vadd.f32 %v545_v10, %v377_v15  ;;  %389 = vadd.xlane.f32.xlu1 %v387_v14 }
 0x12e   : > { %v601_v17 = vpop.f32.mrf.mxu0 }
 0x12f   : > { %385 = vadd.xlane.f32.xlu0 %v378_v16  ;;  %v388_v18 = vmul.f32 %v378_v16, %v378_v16 }
 0x131   : > { %391 = vadd.xlane.f32.xlu1 %v388_v18 }
 0x1b4   : > { %v384_v19 = vpop.xlane.xlu0 %383 }
 0x1b5   : > { %v393_v20 = vmul.f32 0.0078125, %v384_v19 }
 0x1b6   : > { %v390_v21 = vpop.xlane.xlu1 %389 }
 0x1b7   : > { %v397_v22 = vmul.f32 %v393_v20, %v393_v20  ;;  %v395_v23 = vmul.f32 0.0078125, %v390_v21  ;;  %v407_v35 = vsub.f32 %v375_v12, %v393_v20 }
 0x1b8   : > { %v386_v24 = vpop.xlane.xlu0 %385 }
 0x1b9   : > { %v399_v25 = vsub.f32 %v395_v23, %v397_v22  ;;  %v394_v26 = vmul.f32 0.0078125, %v386_v24 }
 0x1ba   : > { %v392_v27 = vpop.xlane.xlu1 %391 }
 0x1bb   : > { %v401_v28 = vmax.f32 %v399_v25, 0.0  ;;  %v398_v29 = vmul.f32 %v394_v26, %v394_v26  ;;  %v396_v30 = vmul.f32 0.0078125, %v392_v27  ;;  %v408_v39 = vsub.f32 %v378_v16, %v394_v26 }
 0x1bd   : > { %v403_v31 = vadd.f32 1e-05, %v401_v28  ;;  %v400_v32 = vsub.f32 %v396_v30, %v398_v29 }
 0x1bf   : > { %674 = vrsqrt.f32 %v403_v31  ;;  %v402_v33 = vmax.f32 %v400_v32, 0.0 }
 0x1c1   : > { %v404_v34 = vadd.f32 1e-05, %v402_v33 }
 0x1c3   : > { %676 = vrsqrt.f32 %v404_v34 }
 0x1cc   : > { %v675_v36 = vpop.eup %674 }
 0x1cd   : > { %v409_v37 = vmul.f32 %v675_v36, %v407_v35 }
 0x1cf   : > { %v417_v41 = vmul.f32 %v555_v38, %v409_v37 }
 0x1d0   : > { %v677_v40 = vpop.eup %676 }
 0x1d1   : > { %v410_v42 = vmul.f32 %v677_v40, %v408_v39  ;;  %v425_v45 = vadd.f32 %v556_v43, %v417_v41 }
 0x1d3   : > { %v418_v44 = vmul.f32 %v555_v38, %v410_v42 }
 0x1d5   : > { %v426_v46 = vadd.f32 %v556_v43, %v418_v44 }
 0x1d7   : > { %v571_v47 = vpack.c.bf16 %v426_v46, %v425_v45 }
 0x1d9   : > { %572 = vst [vmem:[%s257_s27] sm:$0xff] %v571_v47  }
 0x1da   : > { %745 = shalt.err (!%p742_p0)
}
 0x1db   : > { %s746_s26 = scalar_lea.hbm %s995_s11, 128  ;;  %s750_s6 = scalar_lea.hbm %s1045_s5, 256 }
 0x1dc   : > { %p747_p5 = scmp.ne.s32.totalorder %s995_s11, %s746_s26  ;;  %p751_p4 = scmp.lt.s32.totalorder %s995_s11, %s1045_s5 }
 0x1dd   : > { %p752_p6 = scmp.lt.s32.totalorder %s750_s6, %s746_s26 }
 0x1de   : > { %p748_p2 = pnand %p747_p5, %p1063_p11 }
 0x1df   : > { %p753_p8 = por %p752_p6, %p751_p4 }
 0x1e0   : > { %p749_p1 = pneg %p748_p2 }
 0x1e2   : > { %p754_p3 = pnand %p753_p8, %p749_p1 }
 0x1e4   : > { %757 = shalt.err (!%p754_p3)
}
 0x1e5   : > { %s809_s27 = smov 64   ;;  %s810_s28 = smov 4  }
 0x1e6   : > { %608 = dma.vmem_to_hbm [thread:$0]  (%p1063_p11), %s997_s15, 128, %s995_s11, %s438_s17, %s809_s27, %s809_s27, %s810_s28  }
 0x1e7 PF: > { %s466_s12 = sand.u32 1, %s788_s18   ;;  %p1064_p7 = scmp.ne.s32.totalorder %s1052_s25, 0 }
 0x1e8   : > { %p1065_p9 = scmp.ge.s32.totalorder %s800_s21, 2  ;;  %s467_s7 = scalar_lea.sflag [#allocation4], %s466_s12 }
 0x1ea   : > { %p619_p10 = pnand %p1065_p9, %p1064_p7 }
 0x1ec   : > { %p620_p12 = pneg %p619_p10 }
 0x1ee   : > { %783 = dma.done.wait (%p620_p12), %s467_s7, 128  }
 0x1ef   : > { %785 = vsyncadd (%p620_p12), %s467_s7, 4294967168  ;;  %p19_p13 = scmp.ge.s32.totalorder %s895_s30, 4   ;;  %s1066_s18 = smov %s792_s19 }
 0x1f0   : > { %s1067_s19 = smov %s796_s20  ;;  %s1068_s20 = smov %s915_s13 }
 0x1f1   : > { %s1069_s21 = smov %s895_s30  ;;  %21 = sbr.rel (!%p19_p13) target bundleno = 6 (0x6), region = 89 }
 0x1f6   :  { %472 = vsyncpa [#allocation3], 1 }
 0x1f7   :  { %474 = vsyncpa [#allocation3 + $0x1], 1 }
 0x1f8   :  { %475 = vsyncpa [#allocation6], 1 }
 0x1f9   :  { %476 = vsyncpa [#allocation4], 1 }
 0x1fa   :  { %478 = vsyncpa [#allocation4 + $0x1], 1 }

</bundles_post_ra>
